<compile_context>
chip_gen: v5e
topology: v5e:2x2
jax: 0.10.0
libtpu: 0.0.40
codegen_flags: <defaults>
</compile_context>

<pallas_src>
import functools

import jax
import jax.numpy as jnp
from jax import lax
from jax.experimental import pallas as pl
from jax.experimental.pallas import tpu as pltpu


def _self_output_kernel(x_ref, res_ref, w_ref, b_ref, g_ref, beta_ref, o_ref,
                        acc_ref, *, eps):
    # x_ref: (tm, tk)   res_ref: (tm, H)   w_ref: (tk, H)
    # b/g/beta: (1, H)  o_ref: (tm, H)     acc_ref: (tm, H) f32 scratch
    k = pl.program_id(1)

    @pl.when(k == 0)
    def _init():
        acc_ref[...] = jnp.zeros_like(acc_ref)

    # Dense on the MXU in the operands' native dtype; f32 accumulation.
    acc_ref[...] += jnp.dot(x_ref[...], w_ref[...],
                            preferred_element_type=jnp.float32)

    @pl.when(k == pl.num_programs(1) - 1)
    def _finalize():
        h = acc_ref[...] + b_ref[...].astype(jnp.float32)

        # TODO(synk): training-mode dropout (hidden_dropout_prob) not implemented;
        # forward here matches eval/inference where nn.Dropout is the identity.

        # Residual add, then LayerNorm over the last axis, all in f32.
        h = h + res_ref[...].astype(jnp.float32)

        # Single-pass mean / variance (independent reductions -> overlap on the XLUs).
        inv_h = 1.0 / h.shape[-1]
        s1 = jnp.sum(h, axis=-1, keepdims=True)
        s2 = jnp.sum(h * h, axis=-1, keepdims=True)
        mean = s1 * inv_h
        var = jnp.maximum(s2 * inv_h - mean * mean, 0.0)

        h = (h - mean) * lax.rsqrt(var + eps)
        h = h * g_ref[...].astype(jnp.float32) + beta_ref[...].astype(jnp.float32)
        o_ref[...] = h.astype(o_ref.dtype)


def _round_up(x, m):
    return ((x + m - 1) // m) * m


def _vmem_capacity_bytes(default=64 * 1024 * 1024):
    try:
        cap = getattr(pltpu.get_tpu_info(), "vmem_capacity_bytes", None)
        if cap:
            return int(cap)
    except Exception:
        pass
    return default


def _choose_tiles(M, H, in_b, out_b, w_b, budget, tm_req, tk_req):
    """Pick (tm, tk). tk == H means the whole weight stays resident (single-buffered)."""
    tm = max(16, min(_round_up(int(tm_req), 16), _round_up(M, 16)))

    def est(tm_, tk_, w_bufs):
        return (2 * tm_ * tk_ * in_b        # x tiles (double-buffered)
                + 2 * tm_ * H * in_b        # residual tiles
                + 2 * tm_ * H * out_b       # output tiles
                + w_bufs * tk_ * H * w_b    # weight block(s)
                + tm_ * H * 4               # f32 accumulator scratch
                + 8 * H * 4)                # bias / gamma / beta

    if tk_req is not None:
        tk = int(tk_req)
        assert tk == H or (H % tk == 0 and tk % 128 == 0), \
            "tk must equal H, or divide H and be a multiple of 128"
        return tm, tk

    # Preferred: full-K, weight resident (single-buffered since it is grid-invariant).
    if est(tm, H, 1) <= budget:
        return tm, H
    # Shrink the row tile somewhat before giving up on a resident weight.
    while tm > 128 and est(tm, H, 1) > budget:
        tm = max(128, _round_up(tm // 2, 16))
    if est(tm, H, 1) <= budget:
        return tm, H
    # K-tiled fallback (large H on v7x): double-buffered (tk, H) weight blocks.
    for tk in (2048, 1024, 512, 256, 128):
        if H % tk == 0 and est(tm, tk, 2) <= budget:
            return tm, tk
    for tk in (128, 256, 512):   # last resort, may exceed the soft budget
        if H % tk == 0:
            return tm, tk
    return tm, H


def bert_self_output(hidden_states, input_tensor, w_t, b, gamma, beta,
                     *, tm=512, tk=None, out_dtype=None, eps=1e-5):
    """hidden_states/input_tensor: [M, H]; w_t: [H, H] (pre-transposed); b/gamma/beta: [H]."""
    M, H = hidden_states.shape
    assert input_tensor.shape == (M, H)
    assert w_t.shape == (H, H)
    out_dtype = out_dtype if out_dtype is not None else hidden_states.dtype

    # Pure activation-dtype MXU path (bf16 x bf16 when activations are bf16).
    w_t = w_t.astype(hidden_states.dtype)
    b2 = b.reshape(1, H).astype(jnp.float32)
    g2 = gamma.reshape(1, H).astype(jnp.float32)
    be2 = beta.reshape(1, H).astype(jnp.float32)

    in_b = jnp.dtype(hidden_states.dtype).itemsize
    out_b = jnp.dtype(out_dtype).itemsize
    w_b = jnp.dtype(w_t.dtype).itemsize

    # Generation-aware VMEM budget: ~48 MiB on v7x (64 MiB/TC), ~96 MiB on v5e/v6e.
    budget = max(32 * 1024 * 1024, int(0.75 * _vmem_capacity_bytes()))
    tm, tk = _choose_tiles(M, H, in_b, out_b, w_b, budget, tm, tk)

    m_steps = pl.cdiv(M, tm)     # last row-block may be partial: Pallas masks OOB writes
    k_steps = pl.cdiv(H, tk)     # tk divides H (or tk == H) by construction

    w_bufs = 1 if k_steps == 1 else 2
    est = (2 * tm * tk * in_b + 2 * tm * H * in_b + 2 * tm * H * out_b
           + w_bufs * tk * H * w_b + tm * H * 4 + 8 * H * 4)
    vmem_limit = int(min(max(2 * est, 32 * 1024 * 1024), budget))
    vmem_limit = max(vmem_limit, int(1.25 * est))   # never cap below what we need

    cost = pl.CostEstimate(
        flops=2 * M * H * H + 10 * M * H,
        transcendentals=M,
        bytes_accessed=2 * M * H * in_b + M * H * out_b + H * H * w_b + 3 * H * 4)

    def _build_and_call(single_buffer_invariants):
        inv_kw = (dict(pipeline_mode=pl.Buffered(1))
                  if single_buffer_invariants else {})
        # Weight is grid-invariant only when it is fully resident (k_steps == 1).
        if k_steps == 1:
            w_spec = pl.BlockSpec((tk, H), lambda i, k: (k, 0), **inv_kw)
        else:
            w_spec = pl.BlockSpec((tk, H), lambda i, k: (k, 0))

        def param_spec():
            return pl.BlockSpec((1, H), lambda i, k: (0, 0), **inv_kw)

        grid_spec = pltpu.PrefetchScalarGridSpec(
            num_scalar_prefetch=0,
            grid=(m_steps, k_steps),
            in_specs=[
                pl.BlockSpec((tm, tk), lambda i, k: (i, k)),   # hidden_states tile
                pl.BlockSpec((tm, H), lambda i, k: (i, 0)),    # residual tile
                w_spec,                                        # weight block
                param_spec(),                                  # bias
                param_spec(),                                  # gamma
                param_spec(),                                  # beta
            ],
            out_specs=pl.BlockSpec((tm, H), lambda i, k: (i, 0)),
            scratch_shapes=[pltpu.VMEM((tm, H), jnp.float32)],
        )
        return pl.pallas_call(
            functools.partial(_self_output_kernel, eps=eps),
            out_shape=jax.ShapeDtypeStruct((M, H), out_dtype),
            grid_spec=grid_spec,
            compiler_params=pltpu.CompilerParams(
                dimension_semantics=("parallel", "arbitrary"),
                vmem_limit_bytes=vmem_limit,
            ),
            cost_estimate=cost,
        )(hidden_states, input_tensor, w_t, b2, g2, be2)

    try:
        return _build_and_call(True)
    except Exception:
        # Fallback for Pallas versions without pipeline_mode / Buffered(1) support.
        return _build_and_call(False)


def _reference(x, res, w_t, b, gamma, beta, eps=1e-5):
    h = jnp.dot(x, w_t, precision=lax.Precision.HIGHEST) + b
    h = h + res
    mean = jnp.mean(h, axis=-1, keepdims=True)
    var = jnp.mean(jnp.square(h - mean), axis=-1, keepdims=True)
    h = (h - mean) / jnp.sqrt(var + eps)
    return h * gamma + beta


def _make_case(key, M, H):
    k1, k2, k3, k4, k5, k6 = jax.random.split(key, 6)
    x = jax.random.normal(k1, (M, H), dtype=jnp.float32)
    res = jax.random.normal(k2, (M, H), dtype=jnp.float32)
    w = jax.random.normal(k3, (H, H), dtype=jnp.float32) * 0.02   # nn.Linear weight [H,H]
    b = jax.random.normal(k4, (H,), dtype=jnp.float32) * 0.02
    gamma = jnp.ones((H,), jnp.float32) + 0.01 * jax.random.normal(k5, (H,))
    beta = 0.01 * jax.random.normal(k6, (H,), dtype=jnp.float32)
    return x, res, w.T, b, gamma, beta                             # weight pre-transposed


if __name__ == "__main__":
    key = jax.random.PRNGKey(0)
    k_a, k_b = jax.random.split(key)

    # Case 1: toy BertSelfOutput config — batch=2, seq=8, hidden=32 (resident-weight path).
    batch, seq, hidden = 2, 8, 32
    x, res, w_t, b, gamma, beta = _make_case(k_a, batch * seq, hidden)
    out = bert_self_output(x, res, w_t, b, gamma, beta)
    out = jax.block_until_ready(out)
    ref = _reference(x, res, w_t, b, gamma, beta)
    assert out.shape == (batch * seq, hidden)
    assert jnp.allclose(out, ref, atol=2e-5, rtol=2e-5), "case 1 mismatch vs reference"
    _ = out.reshape(batch, seq, hidden)   # glue back to [batch, seq, hidden]

    # Case 2: exercise the K-tiled accumulator path + partial (masked) last row block.
    M2, H2 = 40, 256
    x2, res2, w_t2, b2, gamma2, beta2 = _make_case(k_b, M2, H2)
    out2 = bert_self_output(x2, res2, w_t2, b2, gamma2, beta2, tk=128)
    out2 = jax.block_until_ready(out2)
    ref2 = _reference(x2, res2, w_t2, b2, gamma2, beta2)
    assert out2.shape == (M2, H2)
    assert jnp.allclose(out2, ref2, atol=1e-4, rtol=1e-4), "case 2 mismatch vs reference"

    print("KERNEL_OK")
</pallas_src>

<mosaic_0001>
module attributes {stable_mosaic.version = 11 : i64} {
  func.func @_self_output_kernel(%arg0: i32, %arg1: i32, %arg2: memref<16x32xf32, #tpu.memory_space<vmem>>, %arg3: memref<16x32xf32, #tpu.memory_space<vmem>>, %arg4: memref<32x32xf32, #tpu.memory_space<vmem>>, %arg5: memref<1x32xf32, #tpu.memory_space<vmem>>, %arg6: memref<1x32xf32, #tpu.memory_space<vmem>>, %arg7: memref<1x32xf32, #tpu.memory_space<vmem>>, %arg8: memref<16x32xf32, #tpu.memory_space<vmem>>, %arg9: memref<16x32xf32, #tpu.memory_space<vmem>>) attributes {dimension_semantics = [#tpu.dimension_semantics<parallel>, #tpu.dimension_semantics<arbitrary>], iteration_bounds = array<i64: 1, 1>, scalar_prefetch = 0 : i64, scratch_operands = 1 : i64, tpu.core_type = #tpu.core_type<tc>, window_params = [{transform_indices = @transform_0, window_bounds = array<i64: 16, 32>}, {transform_indices = @transform_1, window_bounds = array<i64: 16, 32>}, {pipeline_mode = #tpu.pipeline_mode<synchronous>, transform_indices = @transform_2, window_bounds = array<i64: 32, 32>}, {pipeline_mode = #tpu.pipeline_mode<synchronous>, transform_indices = @transform_3, window_bounds = array<i64: 1, 32>}, {pipeline_mode = #tpu.pipeline_mode<synchronous>, transform_indices = @transform_4, window_bounds = array<i64: 1, 32>}, {pipeline_mode = #tpu.pipeline_mode<synchronous>, transform_indices = @transform_5, window_bounds = array<i64: 1, 32>}, {transform_indices = @transform_6, window_bounds = array<i64: 16, 32>}]} {
    %c0_i32 = arith.constant 0 : i32
    %0 = arith.cmpi eq, %arg1, %c0_i32 : i32
    %1 = arith.extui %0 : i1 to i32
    %c0_i32_0 = arith.constant 0 : i32
    %2 = arith.cmpi ne, %1, %c0_i32_0 : i32
    scf.if %2 {
      %cst_10 = arith.constant 0.000000e+00 : f32
      %12 = vector.broadcast %cst_10 : f32 to vector<16x32xf32>
      %c0_11 = arith.constant 0 : index
      %c0_12 = arith.constant 0 : index
      %13 = vector.load %arg9[%c0_11, %c0_12] : memref<16x32xf32, #tpu.memory_space<vmem>>, vector<16x32xf32>
      tpu.vector_store %arg9[%c0_11, %c0_12], %12 {strides = array<i32>} : memref<16x32xf32, #tpu.memory_space<vmem>>, vector<16x32xf32>,
    } else {
    }
    %c0 = arith.constant 0 : index
    %c0_1 = arith.constant 0 : index
    %3 = vector.load %arg9[%c0, %c0_1] : memref<16x32xf32, #tpu.memory_space<vmem>>, vector<16x32xf32>
    %c0_2 = arith.constant 0 : index
    %c0_3 = arith.constant 0 : index
    %4 = vector.load %arg2[%c0_2, %c0_3] : memref<16x32xf32, #tpu.memory_space<vmem>>, vector<16x32xf32>
    %c0_4 = arith.constant 0 : index
    %c0_5 = arith.constant 0 : index
    %5 = vector.load %arg4[%c0_4, %c0_5] : memref<32x32xf32, #tpu.memory_space<vmem>>, vector<32x32xf32>
    %cst = arith.constant dense<0.000000e+00> : vector<16x32xf32>
    %6 = tpu.matmul %4, %5, %cst {dimension_numbers = #tpu.dot_dimension_numbers<[1], [0], [0], [1], [0, 0, 1, 1], [], []>} : vector<16x32xf32>, vector<32x32xf32>, vector<16x32xf32> -> vector<16x32xf32>
    %7 = arith.addf %3, %6 : vector<16x32xf32>
    %c0_6 = arith.constant 0 : index
    %c0_7 = arith.constant 0 : index
    %8 = vector.load %arg9[%c0_6, %c0_7] : memref<16x32xf32, #tpu.memory_space<vmem>>, vector<16x32xf32>
    tpu.vector_store %arg9[%c0_6, %c0_7], %7 {strides = array<i32>} : memref<16x32xf32, #tpu.memory_space<vmem>>, vector<16x32xf32>,
    %c0_i32_8 = arith.constant 0 : i32
    %9 = arith.cmpi eq, %arg1, %c0_i32_8 : i32
    %10 = arith.extui %9 : i1 to i32
    %c0_i32_9 = arith.constant 0 : i32
    %11 = arith.cmpi ne, %10, %c0_i32_9 : i32
    scf.if %11 {
      %c0_10 = arith.constant 0 : index
      %c0_11 = arith.constant 0 : index
      %12 = vector.load %arg9[%c0_10, %c0_11] : memref<16x32xf32, #tpu.memory_space<vmem>>, vector<16x32xf32>
      %c0_12 = arith.constant 0 : index
      %c0_13 = arith.constant 0 : index
      %13 = vector.load %arg5[%c0_12, %c0_13] : memref<1x32xf32, #tpu.memory_space<vmem>>, vector<1x32xf32>
      %14 = vector.broadcast %13 : vector<1x32xf32> to vector<16x32xf32>
      %15 = arith.addf %12, %14 : vector<16x32xf32>
      %c0_14 = arith.constant 0 : index
      %c0_15 = arith.constant 0 : index
      %16 = vector.load %arg3[%c0_14, %c0_15] : memref<16x32xf32, #tpu.memory_space<vmem>>, vector<16x32xf32>
      %17 = arith.addf %15, %16 : vector<16x32xf32>
      %cst_16 = arith.constant dense<0.000000e+00> : vector<16xf32>
      %18 = vector.multi_reduction <add>, %17, %cst_16 [1] : vector<16x32xf32> to vector<16xf32>
      %19 = vector.shape_cast %18 : vector<16xf32> to vector<16x1xf32>
      %20 = arith.mulf %17, %17 : vector<16x32xf32>
      %cst_17 = arith.constant dense<0.000000e+00> : vector<16xf32>
      %21 = vector.multi_reduction <add>, %20, %cst_17 [1] : vector<16x32xf32> to vector<16xf32>
      %22 = vector.shape_cast %21 : vector<16xf32> to vector<16x1xf32>
      %cst_18 = arith.constant 3.125000e-02 : f32
      %23 = vector.broadcast %cst_18 : f32 to vector<16x1xf32>
      %24 = arith.mulf %19, %23 : vector<16x1xf32>
      %cst_19 = arith.constant 3.125000e-02 : f32
      %25 = vector.broadcast %cst_19 : f32 to vector<16x1xf32>
      %26 = arith.mulf %22, %25 : vector<16x1xf32>
      %27 = arith.mulf %24, %24 : vector<16x1xf32>
      %28 = arith.subf %26, %27 : vector<16x1xf32>
      %cst_20 = arith.constant 0.000000e+00 : f32
      %29 = vector.broadcast %cst_20 : f32 to vector<16x1xf32>
      %30 = arith.maximumf %28, %29 : vector<16x1xf32>
      %31 = vector.broadcast %24 : vector<16x1xf32> to vector<16x32xf32>
      %32 = arith.subf %17, %31 : vector<16x32xf32>
      %cst_21 = arith.constant 9.99999974E-6 : f32
      %33 = vector.broadcast %cst_21 : f32 to vector<16x1xf32>
      %34 = arith.addf %30, %33 : vector<16x1xf32>
      %35 = math.rsqrt %34 : vector<16x1xf32>
      %36 = vector.broadcast %35 : vector<16x1xf32> to vector<16x32xf32>
      %37 = arith.mulf %32, %36 : vector<16x32xf32>
      %c0_22 = arith.constant 0 : index
      %c0_23 = arith.constant 0 : index
      %38 = vector.load %arg6[%c0_22, %c0_23] : memref<1x32xf32, #tpu.memory_space<vmem>>, vector<1x32xf32>
      %39 = vector.broadcast %38 : vector<1x32xf32> to vector<16x32xf32>
      %40 = arith.mulf %37, %39 : vector<16x32xf32>
      %c0_24 = arith.constant 0 : index
      %c0_25 = arith.constant 0 : index
      %41 = vector.load %arg7[%c0_24, %c0_25] : memref<1x32xf32, #tpu.memory_space<vmem>>, vector<1x32xf32>
      %42 = vector.broadcast %41 : vector<1x32xf32> to vector<16x32xf32>
      %43 = arith.addf %40, %42 : vector<16x32xf32>
      %c0_26 = arith.constant 0 : index
      %c0_27 = arith.constant 0 : index
      %44 = vector.load %arg8[%c0_26, %c0_27] : memref<16x32xf32, #tpu.memory_space<vmem>>, vector<16x32xf32>
      tpu.vector_store %arg8[%c0_26, %c0_27], %43 {strides = array<i32>} : memref<16x32xf32, #tpu.memory_space<vmem>>, vector<16x32xf32>,
    } else {
    }
    return
  }
  func.func @transform_0(%arg0: i32, %arg1: i32) -> (i32, i32) {
    %c0_i32 = arith.constant 0 : i32
    return %arg0, %arg1 : i32, i32
  }
  func.func @transform_1(%arg0: i32, %arg1: i32) -> (i32, i32) {
    %c0_i32 = arith.constant 0 : i32
    %c0_i32_0 = arith.constant 0 : i32
    return %arg0, %c0_i32 : i32, i32
  }
  func.func @transform_2(%arg0: i32, %arg1: i32) -> (i32, i32) {
    %c0_i32 = arith.constant 0 : i32
    %c0_i32_0 = arith.constant 0 : i32
    return %arg1, %c0_i32 : i32, i32
  }
  func.func @transform_3(%arg0: i32, %arg1: i32) -> (i32, i32) {
    %c0_i32 = arith.constant 0 : i32
    %c0_i32_0 = arith.constant 0 : i32
    %c0_i32_1 = arith.constant 0 : i32
    return %c0_i32, %c0_i32_0 : i32, i32
  }
  func.func @transform_4(%arg0: i32, %arg1: i32) -> (i32, i32) {
    %c0_i32 = arith.constant 0 : i32
    %c0_i32_0 = arith.constant 0 : i32
    %c0_i32_1 = arith.constant 0 : i32
    return %c0_i32, %c0_i32_0 : i32, i32
  }
  func.func @transform_5(%arg0: i32, %arg1: i32) -> (i32, i32) {
    %c0_i32 = arith.constant 0 : i32
    %c0_i32_0 = arith.constant 0 : i32
    %c0_i32_1 = arith.constant 0 : i32
    return %c0_i32, %c0_i32_0 : i32, i32
  }
  func.func @transform_6(%arg0: i32, %arg1: i32) -> (i32, i32) {
    %c0_i32 = arith.constant 0 : i32
    %c0_i32_0 = arith.constant 0 : i32
    return %arg0, %c0_i32 : i32, i32
  }
}

module attributes {stable_mosaic.version = 11 : i64} {
  func.func @_self_output_kernel(%arg0: i32, %arg1: i32, %arg2: memref<16x32xf32, #tpu.memory_space<vmem>>, %arg3: memref<16x32xf32, #tpu.memory_space<vmem>>, %arg4: memref<32x32xf32, #tpu.memory_space<vmem>>, %arg5: memref<1x32xf32, #tpu.memory_space<vmem>>, %arg6: memref<1x32xf32, #tpu.memory_space<vmem>>, %arg7: memref<1x32xf32, #tpu.memory_space<vmem>>, %arg8: memref<16x32xf32, #tpu.memory_space<vmem>>, %arg9: memref<16x32xf32, #tpu.memory_space<vmem>>) attributes {dimension_semantics = [#tpu.dimension_semantics<parallel>, #tpu.dimension_semantics<arbitrary>], iteration_bounds = array<i64: 1, 1>, scalar_prefetch = 0 : i64, scratch_operands = 1 : i64, tpu.core_type = #tpu.core_type<tc>, window_params = [{transform_indices = @transform_0, window_bounds = array<i64: 16, 32>}, {transform_indices = @transform_1, window_bounds = array<i64: 16, 32>}, {transform_indices = @transform_2, window_bounds = array<i64: 32, 32>}, {pipeline_mode = #tpu.pipeline_mode<synchronous>, transform_indices = @transform_3, window_bounds = array<i64: 1, 32>}, {pipeline_mode = #tpu.pipeline_mode<synchronous>, transform_indices = @transform_4, window_bounds = array<i64: 1, 32>}, {pipeline_mode = #tpu.pipeline_mode<synchronous>, transform_indices = @transform_5, window_bounds = array<i64: 1, 32>}, {transform_indices = @transform_6, window_bounds = array<i64: 16, 32>}]} {
    %c0_i32 = arith.constant 0 : i32
    %0 = arith.cmpi eq, %arg1, %c0_i32 : i32
    %1 = arith.extui %0 : i1 to i32
    %c0_i32_0 = arith.constant 0 : i32
    %2 = arith.cmpi ne, %1, %c0_i32_0 : i32
    scf.if %2 {
      %cst_10 = arith.constant 0.000000e+00 : f32
      %12 = vector.broadcast %cst_10 : f32 to vector<16x32xf32>
      %c0_11 = arith.constant 0 : index
      %c0_12 = arith.constant 0 : index
      %13 = vector.load %arg9[%c0_11, %c0_12] : memref<16x32xf32, #tpu.memory_space<vmem>>, vector<16x32xf32>
      tpu.vector_store %arg9[%c0_11, %c0_12], %12 {strides = array<i32>} : memref<16x32xf32, #tpu.memory_space<vmem>>, vector<16x32xf32>,
    } else {
    }
    %c0 = arith.constant 0 : index
    %c0_1 = arith.constant 0 : index
    %3 = vector.load %arg9[%c0, %c0_1] : memref<16x32xf32, #tpu.memory_space<vmem>>, vector<16x32xf32>
    %c0_2 = arith.constant 0 : index
    %c0_3 = arith.constant 0 : index
    %4 = vector.load %arg2[%c0_2, %c0_3] : memref<16x32xf32, #tpu.memory_space<vmem>>, vector<16x32xf32>
    %c0_4 = arith.constant 0 : index
    %c0_5 = arith.constant 0 : index
    %5 = vector.load %arg4[%c0_4, %c0_5] : memref<32x32xf32, #tpu.memory_space<vmem>>, vector<32x32xf32>
    %cst = arith.constant dense<0.000000e+00> : vector<16x32xf32>
    %6 = tpu.matmul %4, %5, %cst {dimension_numbers = #tpu.dot_dimension_numbers<[1], [0], [0], [1], [0, 0, 1, 1], [], []>} : vector<16x32xf32>, vector<32x32xf32>, vector<16x32xf32> -> vector<16x32xf32>
    %7 = arith.addf %3, %6 : vector<16x32xf32>
    %c0_6 = arith.constant 0 : index
    %c0_7 = arith.constant 0 : index
    %8 = vector.load %arg9[%c0_6, %c0_7] : memref<16x32xf32, #tpu.memory_space<vmem>>, vector<16x32xf32>
    tpu.vector_store %arg9[%c0_6, %c0_7], %7 {strides = array<i32>} : memref<16x32xf32, #tpu.memory_space<vmem>>, vector<16x32xf32>,
    %c0_i32_8 = arith.constant 0 : i32
    %9 = arith.cmpi eq, %arg1, %c0_i32_8 : i32
    %10 = arith.extui %9 : i1 to i32
    %c0_i32_9 = arith.constant 0 : i32
    %11 = arith.cmpi ne, %10, %c0_i32_9 : i32
    scf.if %11 {
      %c0_10 = arith.constant 0 : index
      %c0_11 = arith.constant 0 : index
      %12 = vector.load %arg9[%c0_10, %c0_11] : memref<16x32xf32, #tpu.memory_space<vmem>>, vector<16x32xf32>
      %c0_12 = arith.constant 0 : index
      %c0_13 = arith.constant 0 : index
      %13 = vector.load %arg5[%c0_12, %c0_13] : memref<1x32xf32, #tpu.memory_space<vmem>>, vector<1x32xf32>
      %14 = vector.broadcast %13 : vector<1x32xf32> to vector<16x32xf32>
      %15 = arith.addf %12, %14 : vector<16x32xf32>
      %c0_14 = arith.constant 0 : index
      %c0_15 = arith.constant 0 : index
      %16 = vector.load %arg3[%c0_14, %c0_15] : memref<16x32xf32, #tpu.memory_space<vmem>>, vector<16x32xf32>
      %17 = arith.addf %15, %16 : vector<16x32xf32>
      %cst_16 = arith.constant dense<0.000000e+00> : vector<16xf32>
      %18 = vector.multi_reduction <add>, %17, %cst_16 [1] : vector<16x32xf32> to vector<16xf32>
      %19 = vector.shape_cast %18 : vector<16xf32> to vector<16x1xf32>
      %20 = arith.mulf %17, %17 : vector<16x32xf32>
      %cst_17 = arith.constant dense<0.000000e+00> : vector<16xf32>
      %21 = vector.multi_reduction <add>, %20, %cst_17 [1] : vector<16x32xf32> to vector<16xf32>
      %22 = vector.shape_cast %21 : vector<16xf32> to vector<16x1xf32>
      %cst_18 = arith.constant 3.125000e-02 : f32
      %23 = vector.broadcast %cst_18 : f32 to vector<16x1xf32>
      %24 = arith.mulf %19, %23 : vector<16x1xf32>
      %cst_19 = arith.constant 3.125000e-02 : f32
      %25 = vector.broadcast %cst_19 : f32 to vector<16x1xf32>
      %26 = arith.mulf %22, %25 : vector<16x1xf32>
      %27 = arith.mulf %24, %24 : vector<16x1xf32>
      %28 = arith.subf %26, %27 : vector<16x1xf32>
      %cst_20 = arith.constant 0.000000e+00 : f32
      %29 = vector.broadcast %cst_20 : f32 to vector<16x1xf32>
      %30 = arith.maximumf %28, %29 : vector<16x1xf32>
      %31 = vector.broadcast %24 : vector<16x1xf32> to vector<16x32xf32>
      %32 = arith.subf %17, %31 : vector<16x32xf32>
      %cst_21 = arith.constant 9.99999974E-6 : f32
      %33 = vector.broadcast %cst_21 : f32 to vector<16x1xf32>
      %34 = arith.addf %30, %33 : vector<16x1xf32>
      %35 = math.rsqrt %34 : vector<16x1xf32>
      %36 = vector.broadcast %35 : vector<16x1xf32> to vector<16x32xf32>
      %37 = arith.mulf %32, %36 : vector<16x32xf32>
      %c0_22 = arith.constant 0 : index
      %c0_23 = arith.constant 0 : index
      %38 = vector.load %arg6[%c0_22, %c0_23] : memref<1x32xf32, #tpu.memory_space<vmem>>, vector<1x32xf32>
      %39 = vector.broadcast %38 : vector<1x32xf32> to vector<16x32xf32>
      %40 = arith.mulf %37, %39 : vector<16x32xf32>
      %c0_24 = arith.constant 0 : index
      %c0_25 = arith.constant 0 : index
      %41 = vector.load %arg7[%c0_24, %c0_25] : memref<1x32xf32, #tpu.memory_space<vmem>>, vector<1x32xf32>
      %42 = vector.broadcast %41 : vector<1x32xf32> to vector<16x32xf32>
      %43 = arith.addf %40, %42 : vector<16x32xf32>
      %c0_26 = arith.constant 0 : index
      %c0_27 = arith.constant 0 : index
      %44 = vector.load %arg8[%c0_26, %c0_27] : memref<16x32xf32, #tpu.memory_space<vmem>>, vector<16x32xf32>
      tpu.vector_store %arg8[%c0_26, %c0_27], %43 {strides = array<i32>} : memref<16x32xf32, #tpu.memory_space<vmem>>, vector<16x32xf32>,
    } else {
    }
    return
  }
  func.func @transform_0(%arg0: i32, %arg1: i32) -> (i32, i32) {
    %c0_i32 = arith.constant 0 : i32
    return %arg0, %arg1 : i32, i32
  }
  func.func @transform_1(%arg0: i32, %arg1: i32) -> (i32, i32) {
    %c0_i32 = arith.constant 0 : i32
    %c0_i32_0 = arith.constant 0 : i32
    return %arg0, %c0_i32 : i32, i32
  }
  func.func @transform_2(%arg0: i32, %arg1: i32) -> (i32, i32) {
    %c0_i32 = arith.constant 0 : i32
    %c0_i32_0 = arith.constant 0 : i32
    return %arg1, %c0_i32 : i32, i32
  }
  func.func @transform_3(%arg0: i32, %arg1: i32) -> (i32, i32) {
    %c0_i32 = arith.constant 0 : i32
    %c0_i32_0 = arith.constant 0 : i32
    %c0_i32_1 = arith.constant 0 : i32
    return %c0_i32, %c0_i32_0 : i32, i32
  }
  func.func @transform_4(%arg0: i32, %arg1: i32) -> (i32, i32) {
    %c0_i32 = arith.constant 0 : i32
    %c0_i32_0 = arith.constant 0 : i32
    %c0_i32_1 = arith.constant 0 : i32
    return %c0_i32, %c0_i32_0 : i32, i32
  }
  func.func @transform_5(%arg0: i32, %arg1: i32) -> (i32, i32) {
    %c0_i32 = arith.constant 0 : i32
    %c0_i32_0 = arith.constant 0 : i32
    %c0_i32_1 = arith.constant 0 : i32
    return %c0_i32, %c0_i32_0 : i32, i32
  }
  func.func @transform_6(%arg0: i32, %arg1: i32) -> (i32, i32) {
    %c0_i32 = arith.constant 0 : i32
    %c0_i32_0 = arith.constant 0 : i32
    return %arg0, %c0_i32 : i32, i32
  }
}

</mosaic_0001>

<bundles_post_ra>
// kernel: tpu_custom_call.1
= control target key start
LH: loop header
LB: loop body
LE: loop exit
PB: predicated region body
PF: predicated region fallthrough
CT: control target
= control target key end

     0   :  { %11 = vsyncpa [#allocation4], 0  ;;  %s428_s0 = inlined_call_operand.hbm [shape: f32[16,32], index: 0, kind: input, shape index: {}]   ;;  %s429_s1 = inlined_call_operand.hbm [shape: f32[16,32], index: 1, kind: input, shape index: {}]   ;;  %s430_s2 = inlined_call_operand.hbm [shape: f32[32,32], index: 2, kind: input, shape index: {}]   ;;  %s431_s3 = inlined_call_operand.vmem [shape: f32[1,32], index: 3, kind: input, shape index: {}]   ;;  %s432_s4 = inlined_call_operand.vmem [shape: f32[1,32], index: 4, kind: input, shape index: {}]   ;;  %s433_s5 = inlined_call_operand.vmem [shape: f32[1,32], index: 5, kind: input, shape index: {}]   ;;  %s434_s6 = inlined_call_operand.hbm [shape: f32[16,32], index: 6, kind: output, shape index: {}]  }
   0x1   :  { %12 = vsyncpa [#allocation7], 0 }
   0x2   :  { %13 = vsyncpa [#allocation5], 0  ;;  %s31_s23 = sshll.u32 %s429_s1, 4  ;;  %s341_s24 = smov [#allocation6]   ;;  %s32_s23 = int_to_ptr.hbm [resolvable:$true] %s31_s23 }
   0x3   :  { %s33_s25 = sshll.u32 %s341_s24, 4  ;;  %s18_s28 = sshll.u32 %s428_s0, 4  ;;  %s34_s25 = int_to_ptr.vmem [resolvable:$true] %s33_s25  ;;  %s19_s28 = int_to_ptr.hbm [resolvable:$true] %s18_s28 }
   0x4   :  { %s342_s29 = smov 128   ;;  %s343_s30 = smov 8  }
   0x5   :  { %39 = dma.hbm_to_vmem [thread:$0]  %s32_s23, 256, %s34_s25, [#allocation7], %s342_s29, %s342_s29, %s343_s30  }
   0x6   :  { %s344_s7 = smov [#allocation3]   ;;  %s44_s1 = sshll.u32 %s430_s2, 4  ;;  %s45_s1 = int_to_ptr.hbm [resolvable:$true] %s44_s1 }
   0x7   :  { %s20_s8 = sshll.u32 %s344_s7, 4  ;;  %s345_s0 = smov [#allocation8]   ;;  %s21_s8 = int_to_ptr.vmem [resolvable:$true] %s20_s8 }
   0x8   :  { %26 = dma.hbm_to_vmem [thread:$0]  %s19_s28, 256, %s21_s8, [#allocation4], %s342_s29, %s342_s29, %s343_s30  }
   0x9   :  { %s46_s11 = sshll.u32 %s345_s0, 4  ;;  %s47_s11 = int_to_ptr.vmem [resolvable:$true] %s46_s11 }
   0xa   :  { %52 = dma.hbm_to_vmem [thread:$0]  %s45_s1, 512, %s47_s11, [#allocation7], %s342_s29, %s342_s29, %s343_s30  }
   0xb   :  { %335 = dma.done.wait [#allocation4], 256  }
   0xc   :  { %336 = vsyncadd [#allocation4], 4294967040 }
   0xd   :  { %337 = dma.done.wait [#allocation7], 768  }
   0xe   :  { %338 = vsyncadd [#allocation7], 4294966528  ;;  %vm75_vm0 = vcmask 261120   ;;  %v346_v0 = vmov 0.0   ;;  %v85_v1 = vld [vmem:[#allocation8 + $0x18] sm:$0xff]  ;;  %v84_v2 = vld [vmem:[#allocation8 + $0x10] sm:$0xff] }
   0xf   :  { %76 = vst.msk [vmem:[#allocation2] sm:$0xff] %vm75_vm0, %v346_v0  ;;  %105 = vmatpush.msra.mxu0 %v85_v1  ;;  %221 = vmatpush.msra.mxu1 %v85_v1  ;;  %v83_v3 = vld [vmem:[#allocation8 + $0x8] sm:$0xff]  ;;  %v82_v4 = vld [vmem:[#allocation8] sm:$0xff]  ;;  %v232_v13 = vld [vmem:[%s431_s3] ss:$0 sm:$0xff]  ;;  %s205_s19 = sshll.u32 %s434_s6, 4  ;;  %s206_s19 = int_to_ptr.hbm [resolvable:$true] %s205_s19 }
  0x10   :  { %77 = vst.msk [vmem:[#allocation2 + $0x8] sm:$0xff] %vm75_vm0, %v346_v0  ;;  %v80_v5 = vld [vmem:[#allocation3] sm:$0xff]  ;;  %v81_v6 = vld [vmem:[#allocation3 + $0x8] sm:$0xff]  ;;  %v131_v15 = vld [vmem:[#allocation6] sm:$0xff] }
  0x11   :  { %106 = vmatpush.msra.mxu0 %v84_v2  ;;  %222 = vmatpush.msra.mxu1 %v84_v2  ;;  %v132_v19 = vld [vmem:[#allocation6 + $0x8] sm:$0xff]  ;;  %v233_v53 = vld [vmem:[%s432_s4] ss:$0 sm:$0xff]  ;;  %s347_s4 = smov [#allocation9]  }
  0x12   :  { %v234_v57 = vld [vmem:[%s433_s5] ss:$0 sm:$0xff]  ;;  %s203_s16 = sshll.u32 %s347_s4, 4  ;;  %s204_s16 = int_to_ptr.vmem [resolvable:$true] %s203_s16 }
  0x13   :  { %107 = vmatpush.msra.mxu0 %v83_v3  ;;  %223 = vmatpush.msra.mxu1 %v83_v3 }
  0x15   :  { %108 = vmatpush.msra.mxu0 %v82_v4  ;;  %224 = vmatpush.msra.mxu1 %v82_v4 }
  0x16   :  { %219 = vmatmul.msk.f32.vlgmr.msra.gmra.mxu0 %vm75_vm0, %v80_v5  ;;  %220 = vmatmul.msk.f32.vlgmr.msra.gmra.mxu1 %vm75_vm0, %v81_v6  ;;  %v78_v7 = vld [vmem:[#allocation2] sm:$0xff] }
  0x17   :  { %v79_v8 = vld [vmem:[#allocation2 + $0x8] sm:$0xff] }
  0x93   :  { %v110_v9 = vpop.f32.mrf.mxu0  ;;  %v113_v10 = vpop.f32.mrf.mxu1 }
  0x94   :  { %v116_v11 = vadd.f32 %v110_v9, %v78_v7  ;;  %v117_v12 = vadd.f32 %v113_v10, %v79_v8 }
  0x96   :  { %118 = vst.msk [vmem:[#allocation2] sm:$0xff] %vm75_vm0, %v116_v11 }
  0x97   :  { %119 = vst.msk [vmem:[#allocation2 + $0x8] sm:$0xff] %vm75_vm0, %v117_v12 }
  0x9d   :  { %v123_v14 = vld [vmem:[#allocation2] sm:$0xff] }
  0x9e   :  { %v129_v16 = vadd.f32 %v232_v13, %v123_v14  ;;  %v124_v17 = vld [vmem:[#allocation2 + $0x8] sm:$0xff] }
  0x9f   :  { %v130_v18 = vadd.f32 %v232_v13, %v124_v17 }
  0xa0   :  { %v133_v20 = vadd.f32 %v131_v15, %v129_v16 }
  0xa1   :  { %v134_v23 = vadd.f32 %v132_v19, %v130_v18 }
  0xa2   :  { %v135_v21 = vsel %vm75_vm0, %v133_v20, 0.0  ;;  %v141_v22 = vmul.f32 %v133_v20, %v133_v20 }
  0xa3   :  { %136 = vadd.xlane.f32.xlu0 %v135_v21  ;;  %v142_v25 = vmul.f32 %v134_v23, %v134_v23  ;;  %v138_v26 = vsel %vm75_vm0, %v134_v23, 0.0 }
  0xa4   :  { %v143_v24 = vsel %vm75_vm0, %v141_v22, 0.0 }
  0xa5   :  { %144 = vadd.xlane.f32.xlu1 %v143_v24  ;;  %v146_v27 = vsel %vm75_vm0, %v142_v25, 0.0 }
  0xab   :  { %139 = vadd.xlane.f32.xlu0 %v138_v26 }
  0xad   :  { %147 = vadd.xlane.f32.xlu1 %v146_v27 }
 0x116   :  { %v137_v28 = vpop.xlane.xlu0 %136 }
 0x117   :  { %v149_v29 = vmul.f32 0.03125, %v137_v28 }
 0x118   :  { %v145_v30 = vpop.xlane.xlu1 %144 }
 0x119   :  { %v153_v31 = vmul.f32 %v149_v29, %v149_v29  ;;  %v151_v32 = vmul.f32 0.03125, %v145_v30  ;;  %v159_v51 = vsub.f32 %v133_v20, %v149_v29 }
 0x11b   :  { %v155_v33 = vsub.f32 %v151_v32, %v153_v31 }
 0x11d   :  { %v157_v34 = vmax.f32 %v155_v33, 0.0 }
 0x11e   :  { %v140_v35 = vpop.xlane.xlu0 %139 }
 0x11f   :  { %v161_v36 = vadd.f32 1e-05, %v157_v34  ;;  %v150_v37 = vmul.f32 0.03125, %v140_v35 }
 0x120   :  { %v148_v38 = vpop.xlane.xlu1 %147 }
 0x121   :  { %235 = vrsqrt.f32 %v161_v36  ;;  %v154_v39 = vmul.f32 %v150_v37, %v150_v37  ;;  %v152_v40 = vmul.f32 0.03125, %v148_v38  ;;  %vm169_vm2 = vweird.f32 %v161_v36 }
 0x122   :  { %v160_v63 = vsub.f32 %v134_v23, %v150_v37 }
 0x123   :  { %v156_v41 = vsub.f32 %v152_v40, %v154_v39 }
 0x125   :  { %v158_v42 = vmax.f32 %v156_v41, 0.0 }
 0x127   :  { %v236_v43 = vpop.eup %235  ;;  %v162_v45 = vadd.f32 1e-05, %v158_v42 }
 0x128   :  { %v164_v44 = vmul.f32 %v236_v43, %v161_v36  ;;  %vm170_vm1 = vweird.f32 %v236_v43 }
 0x129   :  { %237 = vrsqrt.f32 %v162_v45  ;;  %vm171_vm3 = vmor %vm169_vm2, %vm170_vm1  ;;  %vm179_vm5 = vweird.f32 %v162_v45 }
 0x12a   :  { %v165_v46 = vmul.f32 %v236_v43, %v164_v44 }
 0x12c   :  { %v166_v47 = vmul.f32 0.5, %v165_v46 }
 0x12e   :  { %v167_v48 = vsub.f32 1.5, %v166_v47 }
 0x12f   :  { %v238_v49 = vpop.eup %237 }
 0x130   :  { %v168_v50 = vmul.f32 %v236_v43, %v167_v48  ;;  %v174_v52 = vmul.f32 %v238_v49, %v162_v45  ;;  %vm180_vm4 = vweird.f32 %v238_v49 }
 0x131   :  { %vm181_vm6 = vmor %vm179_vm5, %vm180_vm4 }
 0x132   :  { %v172_v54 = vsel %vm171_vm3, %v236_v43, %v168_v50  ;;  %v175_v56 = vmul.f32 %v238_v49, %v174_v52 }
 0x133   :  { %v183_v55 = vmul.f32 %v172_v54, %v159_v51 }
 0x134   :  { %v176_v58 = vmul.f32 0.5, %v175_v56 }
 0x135   :  { %v189_v59 = vmul.f32 %v233_v53, %v183_v55 }
 0x136   :  { %v177_v60 = vsub.f32 1.5, %v176_v58 }
 0x137   :  { %v195_v61 = vadd.f32 %v234_v57, %v189_v59 }
 0x138   :  { %v178_v62 = vmul.f32 %v238_v49, %v177_v60 }
 0x139   :  { %197 = vst.msk [vmem:[#allocation9] sm:$0xff] %vm75_vm0, %v195_v61 }
 0x13a   :  { %v182_v0 = vsel %vm181_vm6, %v238_v49, %v178_v62 }
 0x13b   :  { %v184_v1 = vmul.f32 %v182_v0, %v160_v63 }
 0x13d   :  { %v190_v2 = vmul.f32 %v233_v53, %v184_v1 }
 0x13f   :  { %v196_v3 = vadd.f32 %v234_v57, %v190_v2 }
 0x141   :  { %198 = vst.msk [vmem:[#allocation9 + $0x8] sm:$0xff] %vm75_vm0, %v196_v3 }
 0x142   :  { %211 = dma.vmem_to_hbm [thread:$0]  %s204_s16, 256, %s206_s19, [#allocation5], %s342_s29, %s342_s29, %s343_s30  }
 0x143   :  { %339 = dma.done.wait [#allocation5], 256  }
 0x144   :  { %340 = vsyncadd [#allocation5], 4294967040 }
 0x145   :  { %216 = vsyncpa [#allocation4], 1 }
 0x146   :  { %217 = vsyncpa [#allocation7], 1 }
 0x147   :  { %218 = vsyncpa [#allocation5], 1 }

// kernel: tpu_custom_call.1
= control target key start
LH: loop header
LB: loop body
LE: loop exit
PB: predicated region body
PF: predicated region fallthrough
CT: control target
= control target key end

     0   :  { %11 = vsyncpa [#allocation4], 0  ;;  %s428_s0 = inlined_call_operand.hbm [shape: f32[16,32], index: 0, kind: input, shape index: {}]   ;;  %s429_s1 = inlined_call_operand.hbm [shape: f32[16,32], index: 1, kind: input, shape index: {}]   ;;  %s430_s2 = inlined_call_operand.hbm [shape: f32[32,32], index: 2, kind: input, shape index: {}]   ;;  %s431_s3 = inlined_call_operand.vmem [shape: f32[1,32], index: 3, kind: input, shape index: {}]   ;;  %s432_s4 = inlined_call_operand.vmem [shape: f32[1,32], index: 4, kind: input, shape index: {}]   ;;  %s433_s5 = inlined_call_operand.vmem [shape: f32[1,32], index: 5, kind: input, shape index: {}]   ;;  %s434_s6 = inlined_call_operand.hbm [shape: f32[16,32], index: 6, kind: output, shape index: {}]  }
   0x1   :  { %12 = vsyncpa [#allocation7], 0 }
   0x2   :  { %13 = vsyncpa [#allocation5], 0  ;;  %s31_s23 = sshll.u32 %s429_s1, 4  ;;  %s341_s24 = smov [#allocation6]   ;;  %s32_s23 = int_to_ptr.hbm [resolvable:$true] %s31_s23 }
   0x3   :  { %s33_s25 = sshll.u32 %s341_s24, 4  ;;  %s18_s28 = sshll.u32 %s428_s0, 4  ;;  %s34_s25 = int_to_ptr.vmem [resolvable:$true] %s33_s25  ;;  %s19_s28 = int_to_ptr.hbm [resolvable:$true] %s18_s28 }
   0x4   :  { %s342_s29 = smov 128   ;;  %s343_s30 = smov 8  }
   0x5   :  { %39 = dma.hbm_to_vmem [thread:$0]  %s32_s23, 256, %s34_s25, [#allocation7], %s342_s29, %s342_s29, %s343_s30  }
   0x6   :  { %s344_s7 = smov [#allocation3]   ;;  %s44_s1 = sshll.u32 %s430_s2, 4  ;;  %s45_s1 = int_to_ptr.hbm [resolvable:$true] %s44_s1 }
   0x7   :  { %s20_s8 = sshll.u32 %s344_s7, 4  ;;  %s345_s0 = smov [#allocation8]   ;;  %s21_s8 = int_to_ptr.vmem [resolvable:$true] %s20_s8 }
   0x8   :  { %26 = dma.hbm_to_vmem [thread:$0]  %s19_s28, 256, %s21_s8, [#allocation4], %s342_s29, %s342_s29, %s343_s30  }
   0x9   :  { %s46_s11 = sshll.u32 %s345_s0, 4  ;;  %s47_s11 = int_to_ptr.vmem [resolvable:$true] %s46_s11 }
   0xa   :  { %52 = dma.hbm_to_vmem [thread:$0]  %s45_s1, 512, %s47_s11, [#allocation7], %s342_s29, %s342_s29, %s343_s30  }
   0xb   :  { %335 = dma.done.wait [#allocation4], 256  }
   0xc   :  { %336 = vsyncadd [#allocation4], 4294967040 }
   0xd   :  { %337 = dma.done.wait [#allocation7], 768  }
   0xe   :  { %338 = vsyncadd [#allocation7], 4294966528  ;;  %vm75_vm0 = vcmask 261120   ;;  %v346_v0 = vmov 0.0   ;;  %v85_v1 = vld [vmem:[#allocation8 + $0x18] sm:$0xff]  ;;  %v84_v2 = vld [vmem:[#allocation8 + $0x10] sm:$0xff] }
   0xf   :  { %76 = vst.msk [vmem:[#allocation2] sm:$0xff] %vm75_vm0, %v346_v0  ;;  %105 = vmatpush.msra.mxu0 %v85_v1  ;;  %221 = vmatpush.msra.mxu1 %v85_v1  ;;  %v83_v3 = vld [vmem:[#allocation8 + $0x8] sm:$0xff]  ;;  %v82_v4 = vld [vmem:[#allocation8] sm:$0xff]  ;;  %v232_v13 = vld [vmem:[%s431_s3] ss:$0 sm:$0xff]  ;;  %s205_s19 = sshll.u32 %s434_s6, 4  ;;  %s206_s19 = int_to_ptr.hbm [resolvable:$true] %s205_s19 }
  0x10   :  { %77 = vst.msk [vmem:[#allocation2 + $0x8] sm:$0xff] %vm75_vm0, %v346_v0  ;;  %v80_v5 = vld [vmem:[#allocation3] sm:$0xff]  ;;  %v81_v6 = vld [vmem:[#allocation3 + $0x8] sm:$0xff]  ;;  %v131_v15 = vld [vmem:[#allocation6] sm:$0xff] }
  0x11   :  { %106 = vmatpush.msra.mxu0 %v84_v2  ;;  %222 = vmatpush.msra.mxu1 %v84_v2  ;;  %v132_v19 = vld [vmem:[#allocation6 + $0x8] sm:$0xff]  ;;  %v233_v53 = vld [vmem:[%s432_s4] ss:$0 sm:$0xff]  ;;  %s347_s4 = smov [#allocation9]  }
  0x12   :  { %v234_v57 = vld [vmem:[%s433_s5] ss:$0 sm:$0xff]  ;;  %s203_s16 = sshll.u32 %s347_s4, 4  ;;  %s204_s16 = int_to_ptr.vmem [resolvable:$true] %s203_s16 }
  0x13   :  { %107 = vmatpush.msra.mxu0 %v83_v3  ;;  %223 = vmatpush.msra.mxu1 %v83_v3 }
  0x15   :  { %108 = vmatpush.msra.mxu0 %v82_v4  ;;  %224 = vmatpush.msra.mxu1 %v82_v4 }
  0x16   :  { %219 = vmatmul.msk.f32.vlgmr.msra.gmra.mxu0 %vm75_vm0, %v80_v5  ;;  %220 = vmatmul.msk.f32.vlgmr.msra.gmra.mxu1 %vm75_vm0, %v81_v6  ;;  %v78_v7 = vld [vmem:[#allocation2] sm:$0xff] }
  0x17   :  { %v79_v8 = vld [vmem:[#allocation2 + $0x8] sm:$0xff] }
  0x93   :  { %v110_v9 = vpop.f32.mrf.mxu0  ;;  %v113_v10 = vpop.f32.mrf.mxu1 }
  0x94   :  { %v116_v11 = vadd.f32 %v110_v9, %v78_v7  ;;  %v117_v12 = vadd.f32 %v113_v10, %v79_v8 }
  0x96   :  { %118 = vst.msk [vmem:[#allocation2] sm:$0xff] %vm75_vm0, %v116_v11 }
  0x97   :  { %119 = vst.msk [vmem:[#allocation2 + $0x8] sm:$0xff] %vm75_vm0, %v117_v12 }
  0x9d   :  { %v123_v14 = vld [vmem:[#allocation2] sm:$0xff] }
  0x9e   :  { %v129_v16 = vadd.f32 %v232_v13, %v123_v14  ;;  %v124_v17 = vld [vmem:[#allocation2 + $0x8] sm:$0xff] }
  0x9f   :  { %v130_v18 = vadd.f32 %v232_v13, %v124_v17 }
  0xa0   :  { %v133_v20 = vadd.f32 %v131_v15, %v129_v16 }
  0xa1   :  { %v134_v23 = vadd.f32 %v132_v19, %v130_v18 }
  0xa2   :  { %v135_v21 = vsel %vm75_vm0, %v133_v20, 0.0  ;;  %v141_v22 = vmul.f32 %v133_v20, %v133_v20 }
  0xa3   :  { %136 = vadd.xlane.f32.xlu0 %v135_v21  ;;  %v142_v25 = vmul.f32 %v134_v23, %v134_v23  ;;  %v138_v26 = vsel %vm75_vm0, %v134_v23, 0.0 }
  0xa4   :  { %v143_v24 = vsel %vm75_vm0, %v141_v22, 0.0 }
  0xa5   :  { %144 = vadd.xlane.f32.xlu1 %v143_v24  ;;  %v146_v27 = vsel %vm75_vm0, %v142_v25, 0.0 }
  0xab   :  { %139 = vadd.xlane.f32.xlu0 %v138_v26 }
  0xad   :  { %147 = vadd.xlane.f32.xlu1 %v146_v27 }
 0x116   :  { %v137_v28 = vpop.xlane.xlu0 %136 }
 0x117   :  { %v149_v29 = vmul.f32 0.03125, %v137_v28 }
 0x118   :  { %v145_v30 = vpop.xlane.xlu1 %144 }
 0x119   :  { %v153_v31 = vmul.f32 %v149_v29, %v149_v29  ;;  %v151_v32 = vmul.f32 0.03125, %v145_v30  ;;  %v159_v51 = vsub.f32 %v133_v20, %v149_v29 }
 0x11b   :  { %v155_v33 = vsub.f32 %v151_v32, %v153_v31 }
 0x11d   :  { %v157_v34 = vmax.f32 %v155_v33, 0.0 }
 0x11e   :  { %v140_v35 = vpop.xlane.xlu0 %139 }
 0x11f   :  { %v161_v36 = vadd.f32 1e-05, %v157_v34  ;;  %v150_v37 = vmul.f32 0.03125, %v140_v35 }
 0x120   :  { %v148_v38 = vpop.xlane.xlu1 %147 }
 0x121   :  { %235 = vrsqrt.f32 %v161_v36  ;;  %v154_v39 = vmul.f32 %v150_v37, %v150_v37  ;;  %v152_v40 = vmul.f32 0.03125, %v148_v38  ;;  %vm169_vm2 = vweird.f32 %v161_v36 }
 0x122   :  { %v160_v63 = vsub.f32 %v134_v23, %v150_v37 }
 0x123   :  { %v156_v41 = vsub.f32 %v152_v40, %v154_v39 }
 0x125   :  { %v158_v42 = vmax.f32 %v156_v41, 0.0 }
 0x127   :  { %v236_v43 = vpop.eup %235  ;;  %v162_v45 = vadd.f32 1e-05, %v158_v42 }
 0x128   :  { %v164_v44 = vmul.f32 %v236_v43, %v161_v36  ;;  %vm170_vm1 = vweird.f32 %v236_v43 }
 0x129   :  { %237 = vrsqrt.f32 %v162_v45  ;;  %vm171_vm3 = vmor %vm169_vm2, %vm170_vm1  ;;  %vm179_vm5 = vweird.f32 %v162_v45 }
 0x12a   :  { %v165_v46 = vmul.f32 %v236_v43, %v164_v44 }
 0x12c   :  { %v166_v47 = vmul.f32 0.5, %v165_v46 }
 0x12e   :  { %v167_v48 = vsub.f32 1.5, %v166_v47 }
 0x12f   :  { %v238_v49 = vpop.eup %237 }
 0x130   :  { %v168_v50 = vmul.f32 %v236_v43, %v167_v48  ;;  %v174_v52 = vmul.f32 %v238_v49, %v162_v45  ;;  %vm180_vm4 = vweird.f32 %v238_v49 }
 0x131   :  { %vm181_vm6 = vmor %vm179_vm5, %vm180_vm4 }
 0x132   :  { %v172_v54 = vsel %vm171_vm3, %v236_v43, %v168_v50  ;;  %v175_v56 = vmul.f32 %v238_v49, %v174_v52 }
 0x133   :  { %v183_v55 = vmul.f32 %v172_v54, %v159_v51 }
 0x134   :  { %v176_v58 = vmul.f32 0.5, %v175_v56 }
 0x135   :  { %v189_v59 = vmul.f32 %v233_v53, %v183_v55 }
 0x136   :  { %v177_v60 = vsub.f32 1.5, %v176_v58 }
 0x137   :  { %v195_v61 = vadd.f32 %v234_v57, %v189_v59 }
 0x138   :  { %v178_v62 = vmul.f32 %v238_v49, %v177_v60 }
 0x139   :  { %197 = vst.msk [vmem:[#allocation9] sm:$0xff] %vm75_vm0, %v195_v61 }
 0x13a   :  { %v182_v0 = vsel %vm181_vm6, %v238_v49, %v178_v62 }
 0x13b   :  { %v184_v1 = vmul.f32 %v182_v0, %v160_v63 }
 0x13d   :  { %v190_v2 = vmul.f32 %v233_v53, %v184_v1 }
 0x13f   :  { %v196_v3 = vadd.f32 %v234_v57, %v190_v2 }
 0x141   :  { %198 = vst.msk [vmem:[#allocation9 + $0x8] sm:$0xff] %vm75_vm0, %v196_v3 }
 0x142   :  { %211 = dma.vmem_to_hbm [thread:$0]  %s204_s16, 256, %s206_s19, [#allocation5], %s342_s29, %s342_s29, %s343_s30  }
 0x143   :  { %339 = dma.done.wait [#allocation5], 256  }
 0x144   :  { %340 = vsyncadd [#allocation5], 4294967040 }
 0x145   :  { %216 = vsyncpa [#allocation4], 1 }
 0x146   :  { %217 = vsyncpa [#allocation7], 1 }
 0x147   :  { %218 = vsyncpa [#allocation5], 1 }

</bundles_post_ra>
